<compile_context>
chip_gen: v7x
topology: tpu7x:2x2x1
jax: 0.10.0
libtpu: 0.0.40
codegen_flags: <defaults>
</compile_context>

<pallas_src>
import functools
import math

import jax
import jax.numpy as jnp
from jax.experimental import pallas as pl
from jax.experimental.pallas import tpu as pltpu


def _round_up(x, m):
    return ((x + m - 1) // m) * m


def _pick_tile(dim, pref, mult):
    """Tile <= pref that is either the full dim or a multiple of `mult`.
    Returns (tile, padded_dim)."""
    if dim <= pref:
        return dim, dim
    tile = max(mult, (pref // mult) * mult)
    return tile, _round_up(dim, tile)


# ---------------------------------------------------------------------------
# Kernel A: per-node projection
#   proj = h @ [W_mu_src | W_ls_src | W_mu_dst | W_ls_dst]   (bf16 in/out, f32 acc)
# ---------------------------------------------------------------------------
def _node_proj_kernel(h_ref, w_ref, o_ref, acc_ref):
    @pl.when(pl.program_id(2) == 0)
    def _():
        acc_ref[...] = jnp.zeros_like(acc_ref)

    acc_ref[...] += jnp.dot(h_ref[...], w_ref[...],
                            preferred_element_type=jnp.float32)

    @pl.when(pl.program_id(2) == pl.num_programs(2) - 1)
    def _():
        o_ref[...] = acc_ref[...].astype(o_ref.dtype)


def _node_projection(h_pad, w_pad, *, tile_n, tile_o, tile_k, out_dtype):
    n_pad, f_pad = h_pad.shape
    o_pad = w_pad.shape[1]
    return pl.pallas_call(
        _node_proj_kernel,
        out_shape=jax.ShapeDtypeStruct((n_pad, o_pad), out_dtype),
        grid_spec=pltpu.PrefetchScalarGridSpec(
            num_scalar_prefetch=0,
            grid=(n_pad // tile_n, o_pad // tile_o, f_pad // tile_k),
            in_specs=[
                pl.BlockSpec((tile_n, tile_k), lambda i, j, k: (i, k)),
                pl.BlockSpec((tile_k, tile_o), lambda i, j, k: (k, j)),
            ],
            out_specs=pl.BlockSpec((tile_n, tile_o), lambda i, j, k: (i, j)),
            scratch_shapes=[pltpu.VMEM((tile_n, tile_o), jnp.float32)],
        ),
        compiler_params=pltpu.CompilerParams(
            dimension_semantics=("parallel", "parallel", "arbitrary"),
            vmem_limit_bytes=48 * 1024 * 1024,
        ),
    )(h_pad, w_pad)


# ---------------------------------------------------------------------------
# Kernel B: fused per-edge sampler (elementwise, lane-dense folded layout)
# ---------------------------------------------------------------------------
def _edge_sample_kernel(mu_ref, ls_ref, eps_ref, out_ref, *, sigma_factor):
    mu = mu_ref[...].astype(jnp.float32)
    log_sigma = ls_ref[...].astype(jnp.float32)
    eps = eps_ref[...].astype(jnp.float32)
    z = mu + sigma_factor * jnp.exp(log_sigma) * eps
    # sigmoid(z) = 0.5 * (1 + tanh(z/2)) -- single EUP op, no approx reciprocal.
    out_ref[...] = (0.5 * (jnp.tanh(0.5 * z) + 1.0)).astype(out_ref.dtype)


def _edge_sample(e_mu, e_ls, eps_f, *, sigma_factor, tile_rows, out_dtype):
    ef, lanes = eps_f.shape
    kernel = functools.partial(_edge_sample_kernel, sigma_factor=sigma_factor)

    def row_spec():
        return pl.BlockSpec((tile_rows, lanes), lambda i: (i, 0))

    return pl.pallas_call(
        kernel,
        out_shape=jax.ShapeDtypeStruct((ef, lanes), out_dtype),
        grid_spec=pltpu.PrefetchScalarGridSpec(
            num_scalar_prefetch=0,
            grid=(ef // tile_rows,),
            in_specs=[row_spec(), row_spec(), row_spec()],
            out_specs=row_spec(),
        ),
        compiler_params=pltpu.CompilerParams(
            dimension_semantics=("parallel",),
            vmem_limit_bytes=48 * 1024 * 1024,
        ),
    )(e_mu, e_ls, eps_f)


# ---------------------------------------------------------------------------
# Wrapper
# ---------------------------------------------------------------------------
def edge_logit_normal_guide(h, src, dst, w_src, w_dst, eps, *,
                            sigma_factor=1.0, tile_nodes=256, tile_out=512,
                            tile_k=512, tile_rows=1024,
                            compute_dtype=jnp.bfloat16):
    """h: [N, F]; src/dst: [E] int32; w_src/w_dst: [2D, F] (torch Linear layout);
       eps: [E, D] standard-normal noise.  Returns sampled edge features [E, D]
       in h.dtype."""
    num_nodes, f = h.shape
    num_edges = src.shape[0]
    two_d = w_src.shape[0]
    d = two_d // 2
    four_d = 4 * d
    out_dtype = h.dtype

    # --- fused weight [F, 4D] = [mu_src | ls_src | mu_dst | ls_dst]
    w_all = jnp.concatenate(
        [w_src[:d].T, w_src[d:].T, w_dst[:d].T, w_dst[d:].T], axis=1
    ).astype(compute_dtype)

    # --- kernel A tiling over (node, 4D output, K=F), zero padded
    tile_n = max(8, min((tile_nodes // 8) * 8, _round_up(num_nodes, 8)))
    n_pad = _round_up(num_nodes, tile_n)
    tile_o, o_pad = _pick_tile(four_d, tile_out, 128)
    tile_kk, f_pad = _pick_tile(f, tile_k, 128)

    h_pad = jnp.pad(h.astype(compute_dtype),
                    ((0, n_pad - num_nodes), (0, f_pad - f)))
    w_pad = jnp.pad(w_all, ((0, f_pad - f), (0, o_pad - four_d)))

    proj = _node_projection(h_pad, w_pad, tile_n=tile_n, tile_o=tile_o,
                            tile_k=tile_kk, out_dtype=compute_dtype)  # [n_pad, o_pad]

    # --- fold r edges into the 128-lane axis so kernel B is fully lane-dense
    r = 128 // math.gcd(d, 128)        # edges folded per row; (r * d) % 128 == 0
    lanes = r * d
    ef_min = -(-num_edges // r)

    # auto-shrink the row tile so 3 in + 1 out double-buffered blocks stay ~< 24 MiB
    in_b = jnp.finfo(compute_dtype).bits // 8
    out_b = out_dtype.itemsize
    row_bytes = 2 * lanes * (3 * in_b + out_b)
    max_rows = max(8, ((24 * 1024 * 1024) // row_bytes) // 8 * 8)
    tile_ef = max(8, min((tile_rows // 8) * 8, max_rows, _round_up(ef_min, 8)))
    ef = _round_up(ef_min, tile_ef)
    e_pad = ef * r
    pad_e = e_pad - num_edges

    src_p = jnp.pad(src.astype(jnp.int32), (0, pad_e))
    dst_p = jnp.pad(dst.astype(jnp.int32), (0, pad_e))
    eps_p = jnp.pad(eps.astype(compute_dtype), ((0, pad_e), (0, 0)))

    # --- XLA glue: gather endpoint projections and fuse the endpoint add so the
    # memory-bound E-scale kernel only reads 3 bf16 streams.
    e = proj[:, :two_d][src_p] + proj[:, two_d:four_d][dst_p]   # [e_pad, 2D]

    def fold(x):                       # [e_pad, D] -> [ef, r*D]  (row-major, consistent)
        return x.reshape(ef, lanes)

    e_mu, e_ls = fold(e[:, :d]), fold(e[:, d:])
    eps_f = fold(eps_p)

    out_f = _edge_sample(e_mu, e_ls, eps_f, sigma_factor=float(sigma_factor),
                         tile_rows=tile_ef, out_dtype=out_dtype)
    return out_f.reshape(e_pad, d)[:num_edges]


if __name__ == "__main__":
    key = jax.random.PRNGKey(0)
    k_h, k_src, k_dst, k_wsrc, k_wdst, k_eps = jax.random.split(key, 6)

    # Small shapes consistent with the module: N nodes, F=in_features,
    # D=out_features, E edges.
    N, F, D, E = 8, 16, 32, 16
    sigma_factor = 1.0

    h = jax.random.normal(k_h, (N, F), dtype=jnp.float32)
    src = jax.random.randint(k_src, (E,), 0, N, dtype=jnp.int32)
    dst = jax.random.randint(k_dst, (E,), 0, N, dtype=jnp.int32)

    # Deterministic parameter init (Linear(in_features, 2*out_features, bias=False))
    w_scale = 1.0 / jnp.sqrt(jnp.float32(F))
    w_src = jax.random.uniform(k_wsrc, (2 * D, F), jnp.float32, -w_scale, w_scale)
    w_dst = jax.random.uniform(k_wdst, (2 * D, F), jnp.float32, -w_scale, w_scale)

    # Standard-normal noise for the reparameterized pyro.sample.
    eps = jax.random.normal(k_eps, (E, D), dtype=jnp.float32)

    out = edge_logit_normal_guide(h, src, dst, w_src, w_dst, eps,
                                  sigma_factor=sigma_factor)
    out = jax.block_until_ready(out)
    assert out.shape == (E, D)
    assert out.dtype == h.dtype

    # Reference 1: exact f32 forward pass of the original module.
    h_src_full = h @ w_src.T          # [N, 2D]
    h_dst_full = h @ w_dst.T          # [N, 2D]
    e_full = h_src_full[src] + h_dst_full[dst]
    e_mu_r, e_ls_r = e_full[:, :D], e_full[:, D:]
    ref_f32 = jax.nn.sigmoid(e_mu_r + sigma_factor * jnp.exp(e_ls_r) * eps)

    # Reference 2: same bf16 precision path as the kernels (tighter check).
    hb = h.astype(jnp.bfloat16)
    p_src = jnp.dot(hb, w_src.astype(jnp.bfloat16).T,
                    preferred_element_type=jnp.float32).astype(jnp.bfloat16)
    p_dst = jnp.dot(hb, w_dst.astype(jnp.bfloat16).T,
                    preferred_element_type=jnp.float32).astype(jnp.bfloat16)
    e_bf = (p_src[src] + p_dst[dst]).astype(jnp.float32)
    eps_bf = eps.astype(jnp.bfloat16).astype(jnp.float32)
    ref_bf = jax.nn.sigmoid(e_bf[:, :D]
                            + sigma_factor * jnp.exp(e_bf[:, D:]) * eps_bf)

    assert jnp.allclose(out, ref_bf, atol=1e-2, rtol=1e-2), \
        float(jnp.max(jnp.abs(out - ref_bf)))
    assert jnp.allclose(out, ref_f32, atol=4e-2, rtol=4e-2), \
        float(jnp.max(jnp.abs(out - ref_f32)))
    print("KERNEL_OK")
</pallas_src>

<mosaic_0001>
module attributes {stable_mosaic.version = 11 : i64} {
  func.func @_node_proj_kernel(%arg0: i32, %arg1: i32, %arg2: i32, %arg3: memref<8x16xbf16, #tpu.memory_space<vmem>>, %arg4: memref<16x128xbf16, #tpu.memory_space<vmem>>, %arg5: memref<8x128xbf16, #tpu.memory_space<vmem>>, %arg6: memref<8x128xf32, #tpu.memory_space<vmem>>) attributes {dimension_semantics = [#tpu.dimension_semantics<parallel>, #tpu.dimension_semantics<parallel>, #tpu.dimension_semantics<arbitrary>], iteration_bounds = array<i64: 1, 1, 1>, scalar_prefetch = 0 : i64, scratch_operands = 1 : i64, tpu.core_type = #tpu.core_type<tc>, window_params = [{transform_indices = @transform_0, window_bounds = array<i64: 8, 16>}, {transform_indices = @transform_1, window_bounds = array<i64: 16, 128>}, {transform_indices = @transform_2, window_bounds = array<i64: 8, 128>}]} {
    %c0_i32 = arith.constant 0 : i32
    %0 = arith.cmpi eq, %arg2, %c0_i32 : i32
    %1 = arith.extui %0 : i1 to i32
    %c0_i32_0 = arith.constant 0 : i32
    %2 = arith.cmpi ne, %1, %c0_i32_0 : i32
    scf.if %2 {
      %cst_10 = arith.constant 0.000000e+00 : f32
      %12 = vector.broadcast %cst_10 : f32 to vector<8x128xf32>
      %c0_11 = arith.constant 0 : index
      %c0_12 = arith.constant 0 : index
      %13 = vector.load %arg6[%c0_11, %c0_12] : memref<8x128xf32, #tpu.memory_space<vmem>>, vector<8x128xf32>
      tpu.vector_store %arg6[%c0_11, %c0_12], %12 {strides = array<i32>} : memref<8x128xf32, #tpu.memory_space<vmem>>, vector<8x128xf32>,
    } else {
    }
    %c0 = arith.constant 0 : index
    %c0_1 = arith.constant 0 : index
    %3 = vector.load %arg6[%c0, %c0_1] : memref<8x128xf32, #tpu.memory_space<vmem>>, vector<8x128xf32>
    %c0_2 = arith.constant 0 : index
    %c0_3 = arith.constant 0 : index
    %4 = vector.load %arg3[%c0_2, %c0_3] : memref<8x16xbf16, #tpu.memory_space<vmem>>, vector<8x16xbf16>
    %c0_4 = arith.constant 0 : index
    %c0_5 = arith.constant 0 : index
    %5 = vector.load %arg4[%c0_4, %c0_5] : memref<16x128xbf16, #tpu.memory_space<vmem>>, vector<16x128xbf16>
    %cst = arith.constant dense<0.000000e+00> : vector<8x128xf32>
    %6 = tpu.matmul %4, %5, %cst {dimension_numbers = #tpu.dot_dimension_numbers<[1], [0], [0], [1], [0, 0, 1, 1], [], []>} : vector<8x16xbf16>, vector<16x128xbf16>, vector<8x128xf32> -> vector<8x128xf32>
    %7 = arith.addf %3, %6 : vector<8x128xf32>
    %c0_6 = arith.constant 0 : index
    %c0_7 = arith.constant 0 : index
    %8 = vector.load %arg6[%c0_6, %c0_7] : memref<8x128xf32, #tpu.memory_space<vmem>>, vector<8x128xf32>
    tpu.vector_store %arg6[%c0_6, %c0_7], %7 {strides = array<i32>} : memref<8x128xf32, #tpu.memory_space<vmem>>, vector<8x128xf32>,
    %c0_i32_8 = arith.constant 0 : i32
    %9 = arith.cmpi eq, %arg2, %c0_i32_8 : i32
    %10 = arith.extui %9 : i1 to i32
    %c0_i32_9 = arith.constant 0 : i32
    %11 = arith.cmpi ne, %10, %c0_i32_9 : i32
    scf.if %11 {
      %c0_10 = arith.constant 0 : index
      %c0_11 = arith.constant 0 : index
      %12 = vector.load %arg6[%c0_10, %c0_11] : memref<8x128xf32, #tpu.memory_space<vmem>>, vector<8x128xf32>
      %13 = arith.truncf %12 : vector<8x128xf32> to vector<8x128xbf16>
      %c0_12 = arith.constant 0 : index
      %c0_13 = arith.constant 0 : index
      %14 = vector.load %arg5[%c0_12, %c0_13] : memref<8x128xbf16, #tpu.memory_space<vmem>>, vector<8x128xbf16>
      tpu.vector_store %arg5[%c0_12, %c0_13], %13 {strides = array<i32>} : memref<8x128xbf16, #tpu.memory_space<vmem>>, vector<8x128xbf16>,
    } else {
    }
    return
  }
  func.func @transform_0(%arg0: i32, %arg1: i32, %arg2: i32) -> (i32, i32) {
    %c0_i32 = arith.constant 0 : i32
    return %arg0, %arg2 : i32, i32
  }
  func.func @transform_1(%arg0: i32, %arg1: i32, %arg2: i32) -> (i32, i32) {
    %c0_i32 = arith.constant 0 : i32
    return %arg2, %arg1 : i32, i32
  }
  func.func @transform_2(%arg0: i32, %arg1: i32, %arg2: i32) -> (i32, i32) {
    %c0_i32 = arith.constant 0 : i32
    return %arg0, %arg1 : i32, i32
  }
}

</mosaic_0001>

<bundles_post_ra>
// kernel: tpu_custom_call.1
= control target key start
LH: loop header
LB: loop body
LE: loop exit
PB: predicated region body
PF: predicated region fallthrough
CT: control target
= control target key end

     0   :  { %7 = vsyncpa [#allocation4], 0  ;;  %s277_s0 = inlined_call_operand.hbm [shape: bf16[8,16], index: 0, kind: input, shape index: {}]   ;;  %s278_s1 = inlined_call_operand.hbm [shape: bf16[16,128], index: 1, kind: input, shape index: {}]   ;;  %s279_s2 = inlined_call_operand.hbm [shape: bf16[8,128], index: 2, kind: output, shape index: {}]  }
   0x1   :  { %8 = vsyncpa [#allocation7], 0 }
   0x2   :  { %9 = vsyncpa [#allocation5], 0  ;;  %s212_s9 = smov [#allocation3]   ;;  %s213_s11 = smov [#allocation6]  }
   0x3   :  { %s16_s10 = sshll.u32 %s212_s9, 4  ;;  %s25_s12 = sshll.u32 %s213_s11, 4  ;;  %s17_s10 = int_to_ptr.vmem [resolvable:$true] %s16_s10  ;;  %s234_s12 = int_to_ptr.vmem [resolvable:$true] %s25_s12 }
   0x4   :  { %s140_s15 = scalar_lea.hbm %s277_s0, 64 }
   0x5   :  { %p141_p0 = scmp.ne.s32.totalorder %s277_s0, %s140_s15  ;;  %p144_p1 = scmp.lt.u32.totalorder %s140_s15, %s277_s0 }
   0x7   :  { %p146_p2 = pnand %p144_p1, %p141_p0 }
   0x9   :  { %149 = shalt.err (!%p146_p2)
}
   0xa   :  { %s150_s20 = scalar_lea.vmem %s17_s10, 64  ;;  %p155_p4 = scmp.lt.s32.totalorder %s17_s10, %s17_s10 }
   0xb   :  { %p151_p3 = scmp.ne.s32.totalorder %s17_s10, %s150_s20  ;;  %p156_p5 = scmp.lt.s32.totalorder %s150_s20, %s150_s20 }
   0xd   :  { %p157_p6 = por %p156_p5, %p155_p4 }
   0xf   :  { %p158_p7 = pnand %p157_p6, %p151_p3 }
  0x11   :  { %161 = shalt.err (!%p158_p7)
}
  0x12   :  { %19 = dma.hbm_to_vmem [thread:$0]  %s277_s0, 64, %s17_s10, [#allocation4]  }
  0x13   :  { %s162_s25 = scalar_lea.hbm %s278_s1, 128 }
  0x14   :  { %p163_p8 = scmp.ne.s32.totalorder %s278_s1, %s162_s25  ;;  %p166_p9 = scmp.lt.u32.totalorder %s162_s25, %s278_s1 }
  0x16   :  { %p168_p10 = pnand %p166_p9, %p163_p8 }
  0x18   :  { %171 = shalt.err (!%p168_p10)
}
  0x19   :  { %s172_s30 = scalar_lea.vmem %s234_s12, 128  ;;  %p177_p12 = scmp.lt.s32.totalorder %s234_s12, %s234_s12 }
  0x1a   :  { %p173_p11 = scmp.ne.s32.totalorder %s234_s12, %s172_s30  ;;  %p178_p13 = scmp.lt.s32.totalorder %s172_s30, %s172_s30 }
  0x1c   :  { %p179_p0 = por %p178_p13, %p177_p12 }
  0x1e   :  { %p180_p1 = pnand %p179_p0, %p173_p11 }
  0x20   :  { %183 = shalt.err (!%p180_p1)
}
  0x21   :  { %s214_s0 = smov 64   ;;  %s215_s3 = smov 4  }
  0x22   :  { %31 = dma.hbm_to_vmem [thread:$0]  %s278_s1, 128, %s234_s12, [#allocation7], %s214_s0, %s214_s0, %s215_s3  }
  0x23   :  { %206 = dma.done.wait [#allocation4], 64  }
  0x24   :  { %207 = vsyncadd [#allocation4], 4294967232 }
  0x25   :  { %208 = dma.done.wait [#allocation7], 128  }
  0x26   :  { %209 = vsyncadd [#allocation7], 4294967168  ;;  %v216_v0 = vmov 0.0   ;;  %vm217_vm0 = vmmov 0   ;;  %v139_v1 = vld [vmem:[#allocation6] sm:$0xff]   ;;  %vm54_vm1 = vcmask 130048  }
  0x27   :  { %126 = vmatprep.subr.bf16.mxu0 %v216_v0  ;;  %128 = vmatprep.mubr.msk.bf16.mxu0 %vm217_vm0, %v216_v0  ;;  %v45_v2 = vld [vmem:[#allocation3] sm:$0xf]  ;;  %s218_s6 = smov [#allocation8]  }
  0x28   :  { %127 = vmatpush3.bf16.msra.mxu0 %v139_v1  ;;  %s112_s7 = sshll.u32 %s218_s6, 4  ;;  %s113_s7 = int_to_ptr.vmem [resolvable:$true] %s112_s7 }
  0x29   :  { %s184_s1 = scalar_lea.vmem %s113_s7, 64  ;;  %p189_p3 = scmp.lt.s32.totalorder %s113_s7, %s113_s7 }
  0x2a   :  { %p185_p2 = scmp.ne.s32.totalorder %s113_s7, %s184_s1  ;;  %p190_p4 = scmp.lt.s32.totalorder %s184_s1, %s184_s1 }
  0x2b   :  { %129 = vmatmul.mubr.msk.bf16.vlgmr.msra.gmra.mrb[0].mxu0 %vm54_vm1, %v45_v2 }
  0x2c   :  { %p191_p5 = por %p190_p4, %p189_p3 }
  0x2e   :  { %p192_p6 = pnand %p191_p5, %p185_p2 }
  0xfe   :  { %v92_v3 = vpop.f32.mrb[0].mxu0 }
  0xff   :  { %v104_v4 = vpack.c.bf16 %v92_v3, %v92_v3  ;;  %v130_v5 = vpop.f32.mrb[1].mxu0 }
 0x100   :  { %v95_v6 = vpop.f32.mrb[2].mxu0 }
 0x101   :  { %105 = vst [vmem:[#allocation8] sm:$0xf] %v104_v4  ;;  %v131_v7 = vpop.f32.mrb[3].mxu0 }
 0x102   :  { %195 = shalt.err (!%p192_p6)
}
 0x103   :  { %s196_s10 = scalar_lea.hbm %s279_s2, 64 }
 0x104   :  { %p197_p7 = scmp.ne.s32.totalorder %s279_s2, %s196_s10  ;;  %p200_p8 = scmp.lt.u32.totalorder %s196_s10, %s279_s2 }
 0x106   :  { %p202_p9 = pnand %p200_p8, %p197_p7 }
 0x108   :  { %205 = shalt.err (!%p202_p9)
}
 0x109   :  { %115 = dma.vmem_to_hbm [thread:$0]  %s113_s7, 64, %s279_s2, [#allocation5]  }
 0x10a   :  { %210 = dma.done.wait [#allocation5], 64  }
 0x10b   :  { %211 = vsyncadd [#allocation5], 4294967232 }
 0x10c   :  { %119 = vsyncpa [#allocation4], 1 }
 0x10d   :  { %120 = vsyncpa [#allocation7], 1 }
 0x10e   :  { %121 = vsyncpa [#allocation5], 1 }

</bundles_post_ra>
